<compile_context>
chip_gen: v6e
topology: v6e:2x2x1
jax: 0.10.0
libtpu: 0.0.40
codegen_flags: <defaults>
</compile_context>

<pallas_src>
import functools
import math

import jax
import jax.numpy as jnp
from jax import lax
from jax.experimental import pallas as pl
from jax.experimental.pallas import tpu as pltpu

IN_DIM = 10
H_DIM = 256
OUT_DIM = 1


def _choose_tile(batch, bm):
    """Pick (bm_eff, grid).

    batch <= bm -> one grid step, block == full array (no padding, no forced
    megacore split: splitting a tiny batch costs more per-step overhead / MXU
    underfill than the 2-TC parallelism buys).
    batch  > bm -> bm_eff is a multiple of 128 so the (1, bm_eff) output block
    is lane-dense; the ragged last x block is handled by the pipeline.
    """
    if batch <= bm:
        return batch, 1
    bm_eff = max(128, (bm // 128) * 128)
    grid = -(-batch // bm_eff)
    return bm_eff, grid


def mlp_kernel(x_ref, w1_ref, b1_ref, w2_ref, b2_ref, w3t_ref, b3_ref, o_ref):
    # Layer 1: (bm, 10) @ (10, 256) in f32, f32 accumulate.  K=10 left unpadded.
    h = jnp.dot(x_ref[...], w1_ref[...], preferred_element_type=jnp.float32)
    h = jnp.maximum(h + b1_ref[...], 0.0)                           # (bm, 256) f32

    # Layer 2: (bm, 256) @ (256, 256), bf16 MXU inputs, f32 accumulate.
    h = jnp.dot(h.astype(jnp.bfloat16), w2_ref[...],
                preferred_element_type=jnp.float32)
    h = jnp.maximum(h + b2_ref[...], 0.0)                           # (bm, 256) f32

    # Layer 3: contract the feature axis of w3^T (1, 256) with the feature axis
    # of h (bm, 256) -> (1, bm).  Batch lands on the lane axis, so the store is
    # lane-dense and only 1 f32 per batch row goes back to HBM.
    o = lax.dot_general(w3t_ref[...], h.astype(jnp.bfloat16),
                        dimension_numbers=(((1,), (1,)), ((), ())),
                        preferred_element_type=jnp.float32)         # (1, bm)
    o_ref[...] = o + b3_ref[...]


def prepare_params(params):
    """One-time packing into kernel layout (hoisted out of the forward call)."""
    w1, b1, w2, b2, w3, b3 = params
    return (w1.astype(jnp.float32),                                 # (10, 256)
            b1.reshape(1, H_DIM).astype(jnp.float32),               # (1, 256)
            w2.astype(jnp.bfloat16),                                # (256, 256)
            b2.reshape(1, H_DIM).astype(jnp.float32),               # (1, 256)
            w3.reshape(H_DIM, OUT_DIM).T.astype(jnp.bfloat16),      # (1, 256)
            b3.reshape(1, 1).astype(jnp.float32))                   # (1, 1)


@functools.partial(jax.jit, static_argnames=("bm",))
def regnet_forward(x, prepared_params, *, bm=1024):
    """x: (B, 10) float32; prepared_params from prepare_params(). -> (B, 1) f32."""
    w1, b1, w2, b2, w3t, b3 = prepared_params
    B = x.shape[0]
    bm_eff, grid = _choose_tile(B, bm)
    B_pad = bm_eff * grid

    out = pl.pallas_call(
        mlp_kernel,
        out_shape=jax.ShapeDtypeStruct((1, B_pad), jnp.float32),
        grid_spec=pltpu.PrefetchScalarGridSpec(
            num_scalar_prefetch=0,
            grid=(grid,),
            in_specs=[
                pl.BlockSpec((bm_eff, IN_DIM), lambda i: (i, 0)),    # x tile
                pl.BlockSpec((IN_DIM, H_DIM), lambda i: (0, 0)),     # w1 (f32)
                pl.BlockSpec((1, H_DIM), lambda i: (0, 0)),          # b1
                pl.BlockSpec((H_DIM, H_DIM), lambda i: (0, 0)),      # w2 (bf16)
                pl.BlockSpec((1, H_DIM), lambda i: (0, 0)),          # b2
                pl.BlockSpec((1, H_DIM), lambda i: (0, 0)),          # w3^T (bf16)
                pl.BlockSpec((1, 1), lambda i: (0, 0)),              # b3
            ],
            out_specs=pl.BlockSpec((1, bm_eff), lambda i: (0, i)),
        ),
        compiler_params=pltpu.CompilerParams(
            dimension_semantics=("parallel",)),
    )(x, w1, b1, w2, b2, w3t, b3)

    # Padded lanes (rows beyond B) are garbage and dropped here; do not reduce
    # over the raw kernel output.
    return out[0, :B].reshape(B, OUT_DIM)


def xavier_uniform(key, fan_in, fan_out):
    # Matches torch.nn.init.xavier_uniform_ (gain=1), stored as (in, out).
    bound = math.sqrt(6.0 / (fan_in + fan_out))
    return jax.random.uniform(key, (fan_in, fan_out), jnp.float32,
                              minval=-bound, maxval=bound)


def init_params(key):
    k1, k2, k3 = jax.random.split(key, 3)
    w1 = xavier_uniform(k1, IN_DIM, H_DIM)
    b1 = jnp.zeros((H_DIM,), jnp.float32)
    w2 = xavier_uniform(k2, H_DIM, H_DIM)
    b2 = jnp.zeros((H_DIM,), jnp.float32)
    w3 = xavier_uniform(k3, H_DIM, OUT_DIM)
    b3 = jnp.zeros((OUT_DIM,), jnp.float32)
    return (w1, b1, w2, b2, w3, b3)


def regnet_ref(x, params):
    w1, b1, w2, b2, w3, b3 = params
    h = jnp.maximum(x @ w1 + b1, 0.0)
    h = jnp.maximum(h @ w2 + b2, 0.0)
    return h @ w3 + b3


if __name__ == "__main__":
    key = jax.random.PRNGKey(0)
    kp, kx = jax.random.split(key)
    params = init_params(kp)
    prep = prepare_params(params)   # one-time weight packing (bf16, transposes)

    # Single-grid-step path (batch <= bm, block == full array).
    B = 64
    x = jax.random.normal(kx, (B, IN_DIM), jnp.float32)
    y = jax.block_until_ready(regnet_forward(x, prep))
    y_ref = regnet_ref(x, params)
    assert y.shape == (B, OUT_DIM)
    # bf16 MXU inputs (layers 2/3) with f32 accumulation -> relaxed tolerance.
    assert jnp.allclose(y, y_ref, atol=5e-2, rtol=5e-2)

    # Small batch (not a multiple of 8; still one full-array block).
    y_small = jax.block_until_ready(regnet_forward(x[:10], prep))
    assert y_small.shape == (10, OUT_DIM)
    assert jnp.allclose(y_small, y_ref[:10], atol=5e-2, rtol=5e-2)

    # Multi-step grid with a ragged last block (B > bm path, no x pre-padding).
    B2 = 300
    x2 = jax.random.normal(jax.random.fold_in(kx, 1), (B2, IN_DIM), jnp.float32)
    y2 = jax.block_until_ready(regnet_forward(x2, prep, bm=128))
    assert y2.shape == (B2, OUT_DIM)
    assert jnp.allclose(y2, regnet_ref(x2, params), atol=5e-2, rtol=5e-2)

    print("KERNEL_OK")
</pallas_src>

<mosaic_0001>
module attributes {stable_mosaic.version = 11 : i64} {
  func.func @mlp_kernel(%arg0: i32, %arg1: memref<64x10xf32, #tpu.memory_space<vmem>>, %arg2: memref<10x256xf32, #tpu.memory_space<vmem>>, %arg3: memref<1x256xf32, #tpu.memory_space<vmem>>, %arg4: memref<256x256xbf16, #tpu.memory_space<vmem>>, %arg5: memref<1x256xf32, #tpu.memory_space<vmem>>, %arg6: memref<1x256xbf16, #tpu.memory_space<vmem>>, %arg7: memref<1x1xf32, #tpu.memory_space<vmem>>, %arg8: memref<1x64xf32, #tpu.memory_space<vmem>>) attributes {dimension_semantics = [#tpu.dimension_semantics<parallel>], iteration_bounds = array<i64: 1>, scalar_prefetch = 0 : i64, scratch_operands = 0 : i64, tpu.core_type = #tpu.core_type<tc>, window_params = [{transform_indices = @transform_0, window_bounds = array<i64: 64, 10>}, {pipeline_mode = #tpu.pipeline_mode<synchronous>, transform_indices = @transform_1, window_bounds = array<i64: 10, 256>}, {pipeline_mode = #tpu.pipeline_mode<synchronous>, transform_indices = @transform_2, window_bounds = array<i64: 1, 256>}, {pipeline_mode = #tpu.pipeline_mode<synchronous>, transform_indices = @transform_3, window_bounds = array<i64: 256, 256>}, {pipeline_mode = #tpu.pipeline_mode<synchronous>, transform_indices = @transform_4, window_bounds = array<i64: 1, 256>}, {pipeline_mode = #tpu.pipeline_mode<synchronous>, transform_indices = @transform_5, window_bounds = array<i64: 1, 256>}, {pipeline_mode = #tpu.pipeline_mode<synchronous>, transform_indices = @transform_6, window_bounds = array<i64: 1, 1>}, {transform_indices = @transform_7, window_bounds = array<i64: 1, 64>}]} {
    %c0 = arith.constant 0 : index
    %c0_0 = arith.constant 0 : index
    %0 = vector.load %arg1[%c0, %c0_0] : memref<64x10xf32, #tpu.memory_space<vmem>>, vector<64x10xf32>
    %c0_1 = arith.constant 0 : index
    %c0_2 = arith.constant 0 : index
    %1 = vector.load %arg2[%c0_1, %c0_2] : memref<10x256xf32, #tpu.memory_space<vmem>>, vector<10x256xf32>
    %cst = arith.constant dense<0.000000e+00> : vector<64x256xf32>
    %2 = tpu.matmul %0, %1, %cst {dimension_numbers = #tpu.dot_dimension_numbers<[1], [0], [0], [1], [0, 0, 1, 1], [], []>} : vector<64x10xf32>, vector<10x256xf32>, vector<64x256xf32> -> vector<64x256xf32>
    %c0_3 = arith.constant 0 : index
    %c0_4 = arith.constant 0 : index
    %3 = vector.load %arg3[%c0_3, %c0_4] : memref<1x256xf32, #tpu.memory_space<vmem>>, vector<1x256xf32>
    %4 = vector.broadcast %3 : vector<1x256xf32> to vector<64x256xf32>
    %5 = arith.addf %2, %4 : vector<64x256xf32>
    %cst_5 = arith.constant 0.000000e+00 : f32
    %6 = vector.broadcast %cst_5 : f32 to vector<64x256xf32>
    %7 = arith.maximumf %5, %6 : vector<64x256xf32>
    %8 = arith.truncf %7 : vector<64x256xf32> to vector<64x256xbf16>
    %c0_6 = arith.constant 0 : index
    %c0_7 = arith.constant 0 : index
    %9 = vector.load %arg4[%c0_6, %c0_7] : memref<256x256xbf16, #tpu.memory_space<vmem>>, vector<256x256xbf16>
    %cst_8 = arith.constant dense<0.000000e+00> : vector<64x256xf32>
    %10 = tpu.matmul %8, %9, %cst_8 {dimension_numbers = #tpu.dot_dimension_numbers<[1], [0], [0], [1], [0, 0, 1, 1], [], []>} : vector<64x256xbf16>, vector<256x256xbf16>, vector<64x256xf32> -> vector<64x256xf32>
    %c0_9 = arith.constant 0 : index
    %c0_10 = arith.constant 0 : index
    %11 = vector.load %arg5[%c0_9, %c0_10] : memref<1x256xf32, #tpu.memory_space<vmem>>, vector<1x256xf32>
    %12 = vector.broadcast %11 : vector<1x256xf32> to vector<64x256xf32>
    %13 = arith.addf %10, %12 : vector<64x256xf32>
    %cst_11 = arith.constant 0.000000e+00 : f32
    %14 = vector.broadcast %cst_11 : f32 to vector<64x256xf32>
    %15 = arith.maximumf %13, %14 : vector<64x256xf32>
    %c0_12 = arith.constant 0 : index
    %c0_13 = arith.constant 0 : index
    %16 = vector.load %arg6[%c0_12, %c0_13] : memref<1x256xbf16, #tpu.memory_space<vmem>>, vector<1x256xbf16>
    %17 = arith.truncf %15 : vector<64x256xf32> to vector<64x256xbf16>
    %cst_14 = arith.constant dense<0.000000e+00> : vector<1x64xf32>
    %18 = tpu.matmul %16, %17, %cst_14 {dimension_numbers = #tpu.dot_dimension_numbers<[1], [1], [0], [0], [0, 0, 1, 0], [], []>} : vector<1x256xbf16>, vector<64x256xbf16>, vector<1x64xf32> -> vector<1x64xf32>
    %c0_15 = arith.constant 0 : index
    %c0_16 = arith.constant 0 : index
    %19 = vector.load %arg7[%c0_15, %c0_16] : memref<1x1xf32, #tpu.memory_space<vmem>>, vector<1x1xf32>
    %20 = vector.broadcast %19 : vector<1x1xf32> to vector<1x64xf32>
    %21 = arith.addf %18, %20 : vector<1x64xf32>
    %c0_17 = arith.constant 0 : index
    %c0_18 = arith.constant 0 : index
    %22 = vector.load %arg8[%c0_17, %c0_18] : memref<1x64xf32, #tpu.memory_space<vmem>>, vector<1x64xf32>
    tpu.vector_store %arg8[%c0_17, %c0_18], %21 {strides = array<i32>} : memref<1x64xf32, #tpu.memory_space<vmem>>, vector<1x64xf32>,
    return
  }
  func.func @transform_0(%arg0: i32) -> (i32, i32) {
    %c0_i32 = arith.constant 0 : i32
    %c0_i32_0 = arith.constant 0 : i32
    return %arg0, %c0_i32 : i32, i32
  }
  func.func @transform_1(%arg0: i32) -> (i32, i32) {
    %c0_i32 = arith.constant 0 : i32
    %c0_i32_0 = arith.constant 0 : i32
    %c0_i32_1 = arith.constant 0 : i32
    return %c0_i32, %c0_i32_0 : i32, i32
  }
  func.func @transform_2(%arg0: i32) -> (i32, i32) {
    %c0_i32 = arith.constant 0 : i32
    %c0_i32_0 = arith.constant 0 : i32
    %c0_i32_1 = arith.constant 0 : i32
    return %c0_i32, %c0_i32_0 : i32, i32
  }
  func.func @transform_3(%arg0: i32) -> (i32, i32) {
    %c0_i32 = arith.constant 0 : i32
    %c0_i32_0 = arith.constant 0 : i32
    %c0_i32_1 = arith.constant 0 : i32
    return %c0_i32, %c0_i32_0 : i32, i32
  }
  func.func @transform_4(%arg0: i32) -> (i32, i32) {
    %c0_i32 = arith.constant 0 : i32
    %c0_i32_0 = arith.constant 0 : i32
    %c0_i32_1 = arith.constant 0 : i32
    return %c0_i32, %c0_i32_0 : i32, i32
  }
  func.func @transform_5(%arg0: i32) -> (i32, i32) {
    %c0_i32 = arith.constant 0 : i32
    %c0_i32_0 = arith.constant 0 : i32
    %c0_i32_1 = arith.constant 0 : i32
    return %c0_i32, %c0_i32_0 : i32, i32
  }
  func.func @transform_6(%arg0: i32) -> (i32, i32) {
    %c0_i32 = arith.constant 0 : i32
    %c0_i32_0 = arith.constant 0 : i32
    %c0_i32_1 = arith.constant 0 : i32
    return %c0_i32, %c0_i32_0 : i32, i32
  }
  func.func @transform_7(%arg0: i32) -> (i32, i32) {
    %c0_i32 = arith.constant 0 : i32
    %c0_i32_0 = arith.constant 0 : i32
    return %c0_i32, %arg0 : i32, i32
  }
}

</mosaic_0001>

<bundles_post_ra>
// kernel: regnet_forward.1
= control target key start
LH: loop header
LB: loop body
LE: loop exit
PB: predicated region body
PF: predicated region fallthrough
CT: control target
= control target key end

     0   :  { %s909_s0 = inlined_call_operand.vmem [shape: f32[64,10], index: 0, kind: input, shape index: {}]   ;;  %s910_s1 = inlined_call_operand.vmem [shape: f32[10,256], index: 1, kind: input, shape index: {}]   ;;  %s911_s2 = inlined_call_operand.vmem [shape: f32[1,256], index: 2, kind: input, shape index: {}]   ;;  %s912_s3 = inlined_call_operand.hbm [shape: bf16[256,256], index: 3, kind: input, shape index: {}]   ;;  %s913_s4 = inlined_call_operand.vmem [shape: f32[1,256], index: 4, kind: input, shape index: {}]   ;;  %s914_s5 = inlined_call_operand.vmem [shape: bf16[1,256], index: 5, kind: input, shape index: {}]   ;;  %s915_s6 = inlined_call_operand.<no memory space> [shape: f32[1,1], index: 6, kind: input, shape index: {}]   ;;  %s916_s7 = inlined_call_operand.hbm [shape: f32[1,64], index: 7, kind: output, shape index: {}]  }
   0x1   :  { %v12_v0 = vstv %s915_s6 }
   0x2   :  { %13 = vst [vmem:[#allocation2] sm:$0x1] %v12_v0 }
   0x3   :  { %14 = vsyncpa [#allocation4], 0 }
   0x4   :  { %15 = vsyncpa [#allocation5], 0  ;;  %s774_s26 = smov [#allocation3]  }
   0x5   :  { %s27_s27 = sshll.u32 %s774_s26, 4  ;;  %s28_s27 = int_to_ptr.vmem [resolvable:$true] %s27_s27 }
   0x6   :  { %s738_s28 = scalar_lea.vmem %s28_s27, 4096  ;;  %p743_p1 = scmp.lt.s32.totalorder %s28_s27, %s28_s27 }
   0x7   :  { %p739_p0 = scmp.ne.s32.totalorder %s28_s27, %s738_s28  ;;  %p744_p2 = scmp.lt.s32.totalorder %s738_s28, %s738_s28 }
   0x9   :  { %p745_p3 = por %p744_p2, %p743_p1 }
   0xb   :  { %p746_p4 = pnand %p745_p3, %p739_p0 }
   0xd   :  { %749 = shalt.err (!%p746_p4)
}
   0xe   :  { %s775_s29 = smov 128   ;;  %s776_s30 = smov 8  }
   0xf   :  { %33 = dma.hbm_to_vmem [thread:$0]  %s912_s3, 4096, %s28_s27, [#allocation4], %s775_s29, %s775_s29, %s776_s30  }
  0x10   :  { %770 = dma.done.wait [#allocation4], 4096  }
  0x11   :  { %771 = vsyncadd [#allocation4], 4294963200  ;;  %v777_v1 = vmov 0.0   ;;  %vm93_vm0 = vcmask 1041408   ;;  %v55_v2 = vld [vmem:[%s910_s1 + $0x18] sm:$0x3]  ;;  %v58_v46 = vlaneseq }
  0x12   :  { %164 = vmatprep.mubr.f32.mxu0 %v777_v1  ;;  %v54_v3 = vld [vmem:[%s910_s1 + $0x10] sm:$0x3]  ;;  %v53_v4 = vld [vmem:[%s910_s1 + $0x8] sm:$0xff]  ;;  %631 = vmatprep.subr.msk.mxu0 %vm93_vm0, %v55_v2  ;;  %v52_v5 = vld [vmem:[%s910_s1] sm:$0xff]  ;;  %vm68_vm1 = vcmask 80896   ;;  %vm614_vm2 = vcmask 516096  }
  0x13   :  { %632 = vmatpush1.msk.msra.mxu0 %vm93_vm0, %v54_v3  ;;  %v44_v6 = vld [vmem:[%s909_s0] sm:$0xff]  ;;  %v684_v8 = vld [vmem:[#allocation3 + $0x70] ss:$8 sps:$4 sm:$0xff]   ;;  %v45_v9 = vld [vmem:[%s909_s0 + $0x8] sm:$0xff]  ;;  %v871_v47 = vshrl.u32 %v58_v46, 7 }
  0x14   :  { %130 = vmatprep.subr.mxu0 %v53_v4  ;;  %v682_v7 = vld [vmem:[#allocation3 + $0x74] ss:$8 sps:$4 sm:$0xff]   ;;  %v685_v10 = vld [vmem:[#allocation3 + $0x64] ss:$8 sps:$4 sm:$0xff]   ;;  %v687_v11 = vld [vmem:[#allocation3 + $0x60] ss:$8 sps:$4 sm:$0xff]  }
  0x15   :  { %131 = vmatpush1.msra.mxu0 %v52_v5  ;;  %441 = vmatprep.subr.bf16.mxu1 %v682_v7  ;;  %v688_v12 = vld [vmem:[#allocation3 + $0x54] ss:$8 sps:$4 sm:$0xff]   ;;  %v690_v14 = vld [vmem:[#allocation3 + $0x50] ss:$8 sps:$4 sm:$0xff]   ;;  %v691_v15 = vld [vmem:[#allocation3 + $0x44] ss:$8 sps:$4 sm:$0xff]  }
  0x16   :  { %633 = vmatmul.mubr.msk.f32.vlgmr.msra.gmra.mxu0 %vm68_vm1, %v44_v6  ;;  %442 = vmatpush1.bf16.msra.mxu1 %v684_v8  ;;  %v46_v13 = vld [vmem:[%s909_s0 + $0x10] sm:$0xff]  ;;  %v47_v16 = vld [vmem:[%s909_s0 + $0x18] sm:$0xff]  ;;  %v693_v17 = vld [vmem:[#allocation3 + $0x40] ss:$8 sps:$4 sm:$0xff]   ;;  %v64_v48 = vsub.s32 1, %v871_v47  ;;  %v875_v49 = vsub.s32 0, %v871_v47 }
  0x17   :  { %170 = vmatprep.mubr.f32.mxu0 %v777_v1  ;;  %443 = vmatprep.subr.bf16.mxu1 %v685_v10  ;;  %v694_v18 = vld [vmem:[#allocation3 + $0x34] ss:$8 sps:$4 sm:$0xff]   ;;  %v696_v20 = vld [vmem:[#allocation3 + $0x30] ss:$8 sps:$4 sm:$0xff]   ;;  %v697_v21 = vld [vmem:[#allocation3 + $0x24] ss:$8 sps:$4 sm:$0xff]  }
  0x18   :  { %v48_v19 = vld [vmem:[%s909_s0 + $0x20] sm:$0xff]  ;;  %v49_v22 = vld [vmem:[%s909_s0 + $0x28] sm:$0xff]  ;;  %v50_v25 = vld [vmem:[%s909_s0 + $0x30] sm:$0xff] }
  0x19   :  { %v699_v23 = vld [vmem:[#allocation3 + $0x20] ss:$8 sps:$4 sm:$0xff]   ;;  %v700_v24 = vld [vmem:[#allocation3 + $0x14] ss:$8 sps:$4 sm:$0xff]   ;;  %v702_v26 = vld [vmem:[#allocation3 + $0x10] ss:$8 sps:$4 sm:$0xff]  }
  0x1a   :  { %634 = vmatmul.mubr.msk.f32.gmra.mxu0 %vm68_vm1, %v45_v9  ;;  %444 = vmatpush1.bf16.msra.mxu1 %v687_v11  ;;  %v703_v27 = vld [vmem:[#allocation3 + $0x4] ss:$8 sps:$4 sm:$0xff]   ;;  %v51_v28 = vld [vmem:[%s909_s0 + $0x38] sm:$0xff]  ;;  %v705_v29 = vld [vmem:[#allocation3] ss:$8 sps:$4 sm:$0xff]  }
  0x1b   :  { %176 = vmatprep.mubr.f32.mxu0 %v777_v1  ;;  %445 = vmatprep.subr.bf16.mxu1 %v688_v12  ;;  %v706_v30 = vld [vmem:[#allocation3 + $0xf4] ss:$8 sps:$4 sm:$0xff]   ;;  %v708_v31 = vld [vmem:[#allocation3 + $0xf0] ss:$8 sps:$4 sm:$0xff]   ;;  %v709_v32 = vld [vmem:[#allocation3 + $0xe4] ss:$8 sps:$4 sm:$0xff]  }
  0x1c   :  { %v711_v33 = vld [vmem:[#allocation3 + $0xe0] ss:$8 sps:$4 sm:$0xff]   ;;  %v712_v34 = vld [vmem:[#allocation3 + $0xd4] ss:$8 sps:$4 sm:$0xff]   ;;  %v714_v35 = vld [vmem:[#allocation3 + $0xd0] ss:$8 sps:$4 sm:$0xff]  }
  0x1d   :  { %v715_v36 = vld [vmem:[#allocation3 + $0xc4] ss:$8 sps:$4 sm:$0xff]   ;;  %v717_v37 = vld [vmem:[#allocation3 + $0xc0] ss:$8 sps:$4 sm:$0xff]   ;;  %v718_v38 = vld [vmem:[#allocation3 + $0xb4] ss:$8 sps:$4 sm:$0xff]  }
  0x1e   :  { %635 = vmatmul.mubr.msk.f32.gmra.mxu0 %vm68_vm1, %v46_v13  ;;  %446 = vmatpush1.bf16.msra.mxu1 %v690_v14  ;;  %v720_v39 = vld [vmem:[#allocation3 + $0xb0] ss:$8 sps:$4 sm:$0xff]   ;;  %v721_v40 = vld [vmem:[#allocation3 + $0xa4] ss:$8 sps:$4 sm:$0xff]   ;;  %v723_v41 = vld [vmem:[#allocation3 + $0xa0] ss:$8 sps:$4 sm:$0xff]  }
  0x1f   :  { %182 = vmatprep.mubr.f32.mxu0 %v777_v1  ;;  %447 = vmatprep.subr.bf16.mxu1 %v691_v15  ;;  %v724_v42 = vld [vmem:[#allocation3 + $0x94] ss:$8 sps:$4 sm:$0xff]   ;;  %v726_v43 = vld [vmem:[#allocation3 + $0x90] ss:$8 sps:$4 sm:$0xff]   ;;  %v727_v44 = vld [vmem:[#allocation3 + $0x84] ss:$8 sps:$4 sm:$0xff]  }
  0x20   :  { %v729_v45 = vld [vmem:[#allocation3 + $0x80] ss:$8 sps:$4 sm:$0xff]  }
  0x21   :  { %v56_v50 = vld [vmem:[%s911_s2] sm:$0x3] }
  0x22   :  { %636 = vmatmul.mubr.msk.f32.gmra.mxu0 %vm68_vm1, %v47_v16  ;;  %448 = vmatpush1.bf16.msra.mxu1 %v693_v17  ;;  %v65_v52 = vrot.slane %v56_v50, %v64_v48  ;;  %v61_v53 = vrot.slane %v56_v50, %v875_v49  ;;  %v886_v50 = vld.sshfl [vmem:[%s914_s5] sm:$0x11 pattern:$0x75316420] }
  0x23   :  { %188 = vmatprep.mubr.f32.mxu0 %v777_v1  ;;  %449 = vmatprep.subr.bf16.mxu1 %v694_v18 }
  0x26   :  { %637 = vmatmul.mubr.msk.f32.gmra.mxu0 %vm68_vm1, %v48_v19  ;;  %450 = vmatpush1.bf16.msra.mxu1 %v696_v20 }
  0x27   :  { %194 = vmatprep.mubr.f32.mxu0 %v777_v1  ;;  %451 = vmatprep.subr.bf16.mxu1 %v697_v21 }
  0x2a   :  { %638 = vmatmul.mubr.msk.f32.gmra.mxu0 %vm68_vm1, %v49_v22  ;;  %452 = vmatpush1.bf16.msra.mxu1 %v699_v23 }
  0x2b   :  { %200 = vmatprep.mubr.f32.mxu0 %v777_v1  ;;  %453 = vmatprep.subr.bf16.mxu1 %v700_v24 }
  0x2e   :  { %639 = vmatmul.mubr.msk.f32.gmra.mxu0 %vm68_vm1, %v50_v25  ;;  %454 = vmatpush1.bf16.msra.mxu1 %v702_v26 }
  0x2f   :  { %206 = vmatprep.mubr.f32.mxu0 %v777_v1  ;;  %455 = vmatprep.subr.bf16.mxu1 %v703_v27 }
  0x32   :  { %640 = vmatmul.mubr.msk.f32.gmra.mxu0 %vm68_vm1, %v51_v28  ;;  %456 = vmatpush1.bf16.msra.mxu1 %v705_v29 }
  0x33   :  { %457 = vmatprep.subr.bf16.mxu1 %v706_v30 }
  0x36   :  { %458 = vmatpush2.bf16.msra.mxu1 %v708_v31 }
  0x37   :  { %459 = vmatprep.subr.bf16.mxu1 %v709_v32 }
  0x3a   :  { %460 = vmatpush2.bf16.msra.mxu1 %v711_v33 }
  0x3b   :  { %461 = vmatprep.subr.bf16.mxu1 %v712_v34 }
  0x3e   :  { %462 = vmatpush2.bf16.msra.mxu1 %v714_v35 }
  0x3f   :  { %463 = vmatprep.subr.bf16.mxu1 %v715_v36 }
  0x42   :  { %464 = vmatpush2.bf16.msra.mxu1 %v717_v37 }
  0x43   :  { %465 = vmatprep.subr.bf16.mxu1 %v718_v38 }
  0x46   :  { %466 = vmatpush2.bf16.msra.mxu1 %v720_v39 }
  0x47   :  { %467 = vmatprep.subr.bf16.mxu1 %v721_v40 }
  0x4a   :  { %468 = vmatpush2.bf16.msra.mxu1 %v723_v41 }
  0x4b   :  { %469 = vmatprep.subr.bf16.mxu1 %v724_v42 }
  0x4e   :  { %470 = vmatpush2.bf16.msra.mxu1 %v726_v43 }
  0x4f   :  { %471 = vmatprep.subr.bf16.mxu1 %v727_v44 }
  0x52   :  { %472 = vmatpush2.bf16.msra.mxu1 %v729_v45  ;;  %v778_v45 = vmov 1966171168  }
  0x53   :  { %v559_v46 = vunpack.c.l.s4 %v778_v45 }
  0xd6   :  { %v166_v51 = vpop.f32.mrf.mxu0 }
  0xd7   :  { %v167_v58 = vadd.f32 %v166_v51, %v61_v53  ;;  %v560_v51 = vunpack.c.0.s8 %v559_v46 }
  0xd8   :  { %v168_v54 = vpop.f32.mrf.mxu0 }
  0xd9   :  { %v169_v56 = vadd.f32 %v168_v54, %v65_v52  ;;  %v213_v1 = vmax.f32 %v167_v58, 0.0 }
  0xda   :  { %v172_v55 = vpop.f32.mrf.mxu0 }
  0xdb   :  { %v173_v57 = vadd.f32 %v172_v55, %v61_v53  ;;  %v214_v63 = vmax.f32 %v169_v56, 0.0  ;;  %v539_v56 = vld [vmem:[#allocation2] sm:$0x1] }
  0xdc   :  { %v174_v59 = vpop.f32.mrf.mxu0 }
  0xdd   :  { %v175_v60 = vadd.f32 %v174_v59, %v65_v52  ;;  %v215_v61 = vmax.f32 %v173_v57, 0.0  ;;  %v779_v57 = vmov 0  }
  0xde   :  { %v178_v62 = vpop.f32.mrf.mxu0  ;;  %681 = vset.pattern.permute.xlu0 %v779_v57 }
  0xdf   :  { %v216_v0 = vmax.f32 %v175_v60, 0.0  ;;  %v229_v4 = vpack.c.bf16 %v215_v61, %v213_v1  ;;  %v179_v8 = vadd.f32 %v178_v62, %v61_v53  ;;  %542 = vperm.xlu0 %681, %v539_v56  }
  0xe0   :  { %v180_v2 = vpop.f32.mrf.mxu0 }
  0xe1   :  { %v230_v3 = vpack.c.bf16 %v216_v0, %v214_v63  ;;  %v181_v6 = vadd.f32 %v180_v2, %v65_v52  ;;  %v217_v15 = vmax.f32 %v179_v8, 0.0 }
  0xe2   :  { %v184_v5 = vpop.f32.mrf.mxu0 }
  0xe3   :  { %v185_v7 = vadd.f32 %v184_v5, %v61_v53  ;;  %473 = vmatprep.mubr.bf16.mxu1 %v230_v3  ;;  %v218_v13 = vmax.f32 %v181_v6, 0.0  ;;  %v269_v6 = vld [vmem:[%s913_s4] sm:$0x3]  ;;  %s780_s4 = smov [#allocation6]  }
  0xe4   :  { %v186_v9 = vpop.f32.mrf.mxu0  ;;  %474 = vmatmul.mubr.bf16.vlgmr.msra.gmra.mxu1 %v229_v4  ;;  %s622_s10 = sshll.u32 %s780_s4, 4  ;;  %s623_s10 = int_to_ptr.vmem [resolvable:$true] %s622_s10 }
  0xe5   :  { %v187_v10 = vadd.f32 %v186_v9, %v65_v52  ;;  %v219_v11 = vmax.f32 %v185_v7, 0.0  ;;  %v274_v9 = vrot.slane %v269_v6, %v875_v49  ;;  %s750_s11 = scalar_lea.vmem %s623_s10, 16  ;;  %s754_s12 = scalar_lea.vmem %s623_s10, 32 }
  0xe6   :  { %v190_v12 = vpop.f32.mrf.mxu0  ;;  %p751_p5 = scmp.ne.s32.totalorder %s623_s10, %s750_s11  ;;  %p755_p6 = scmp.lt.s32.totalorder %s623_s10, %s623_s10 }
  0xe7   :  { %v220_v14 = vmax.f32 %v187_v10, 0.0  ;;  %v231_v18 = vpack.c.bf16 %v219_v11, %v217_v15  ;;  %v191_v22 = vadd.f32 %v190_v12, %v61_v53  ;;  %v278_v10 = vrot.slane %v269_v6, %v64_v48  ;;  %p756_p7 = scmp.lt.s32.totalorder %s754_s12, %s750_s11 }
  0xe8   :  { %v192_v16 = vpop.f32.mrf.mxu0 }
  0xe9   :  { %v232_v17 = vpack.c.bf16 %v220_v14, %v218_v13  ;;  %v193_v20 = vadd.f32 %v192_v16, %v65_v52  ;;  %v221_v29 = vmax.f32 %v191_v22, 0.0  ;;  %p757_p8 = por %p756_p7, %p755_p6 }
  0xea   :  { %v196_v19 = vpop.f32.mrf.mxu0 }
  0xeb   :  { %v197_v21 = vadd.f32 %v196_v19, %v61_v53  ;;  %483 = vmatprep.mubr.bf16.mxu1 %v232_v17  ;;  %v222_v27 = vmax.f32 %v193_v20, 0.0  ;;  %p758_p9 = pnand %p757_p8, %p751_p5 }
  0xec   :  { %v198_v23 = vpop.f32.mrf.mxu0  ;;  %484 = vmatmul.mubr.bf16.gmra.mxu1 %v231_v18 }
  0xed   :  { %v199_v24 = vadd.f32 %v198_v23, %v65_v52  ;;  %v223_v25 = vmax.f32 %v197_v21, 0.0 }
  0xee   :  { %v202_v26 = vpop.f32.mrf.mxu0 }
  0xef   :  { %v224_v28 = vmax.f32 %v199_v24, 0.0  ;;  %v233_v32 = vpack.c.bf16 %v223_v25, %v221_v29  ;;  %v203_v36 = vadd.f32 %v202_v26, %v61_v53 }
  0xf0   :  { %v204_v30 = vpop.f32.mrf.mxu0 }
  0xf1   :  { %v234_v31 = vpack.c.bf16 %v224_v28, %v222_v27  ;;  %v205_v34 = vadd.f32 %v204_v30, %v65_v52  ;;  %v225_v42 = vmax.f32 %v203_v36, 0.0 }
  0xf2   :  { %v208_v33 = vpop.f32.mrf.mxu0 }
  0xf3   :  { %v209_v35 = vadd.f32 %v208_v33, %v61_v53  ;;  %493 = vmatprep.mubr.bf16.mxu1 %v234_v31  ;;  %v226_v40 = vmax.f32 %v205_v34, 0.0  ;;  %v557_v53 = vcombine.high %v886_v50, %v886_v50 }
  0xf4   :  { %v210_v37 = vpop.f32.mrf.mxu0  ;;  %494 = vmatmul.mubr.bf16.gmra.mxu1 %v233_v32 }
  0xf5   :  { %v211_v38 = vadd.f32 %v210_v37, %v65_v52  ;;  %v227_v39 = vmax.f32 %v209_v35, 0.0  ;;  %v891_v52 = vsub.s32 %v560_v51, %v871_v47 }
  0xf7   :  { %v228_v41 = vmax.f32 %v211_v38, 0.0  ;;  %v235_v44 = vpack.c.bf16 %v227_v39, %v225_v42  ;;  %v564_v54 = vrot.slane %v886_v50, %v891_v52  ;;  %v571_v55 = vrot.slane %v557_v53, %v891_v52 }
  0xf9   :  { %v236_v43 = vpack.c.bf16 %v228_v41, %v226_v40  ;;  %606 = vmatprep.mubr.bf16.mxu0 %v571_v55 }
  0xfb   :  { %503 = vmatprep.mubr.bf16.mxu1 %v236_v43 }
  0xfc   :  { %504 = vmatmul.mubr.bf16.gmra.mxu1 %v235_v44 }
 0x15a   :  { %v543_v57 = vpop.permute.xlu0 %542 }
 0x1a4   :  { %v475_v58 = vpop.f32.mrf.mxu1 }
 0x1a5   :  { %v476_v51 = vadd.f32 %v475_v58, %v274_v9 }
 0x1a6   :  { %v477_v59 = vpop.f32.mrf.mxu1 }
 0x1a7   :  { %v478_v39 = vadd.f32 %v477_v59, %v278_v10  ;;  %v514_v55 = vmax.f32 %v476_v51, 0.0  ;;  %v548_v59 = vrot.slane %v543_v57, %v875_v49 }
 0x1a8   :  { %v479_v60 = vpop.f32.mrf.mxu1 }
 0x1a9   :  { %v515_v43 = vmax.f32 %v478_v39, 0.0  ;;  %v480_v44 = vadd.f32 %v479_v60, %v274_v9 }
 0x1aa   :  { %v481_v61 = vpop.f32.mrf.mxu1 }
 0x1ab   :  { %v482_v36 = vadd.f32 %v481_v61, %v278_v10  ;;  %v516_v53 = vmax.f32 %v480_v44, 0.0 }
 0x1ac   :  { %v485_v62 = vpop.f32.mrf.mxu1 }
 0x1ad   :  { %v486_v38 = vadd.f32 %v485_v62, %v274_v9  ;;  %v517_v41 = vmax.f32 %v482_v36, 0.0  ;;  %v531_v56 = vpack.c.bf16 %v516_v53, %v514_v55 }
 0x1ae   :  { %v487_v63 = vpop.f32.mrf.mxu1 }
 0x1af   :  { %v488_v29 = vadd.f32 %v487_v63, %v278_v10  ;;  %v518_v42 = vmax.f32 %v486_v38, 0.0  ;;  %v532_v46 = vpack.c.bf16 %v517_v41, %v515_v43 }
 0x1b0   :  { %v489_v0 = vpop.f32.mrf.mxu1 }
 0x1b1   :  { %v519_v33 = vmax.f32 %v488_v29, 0.0  ;;  %v490_v34 = vadd.f32 %v489_v0, %v274_v9 }
 0x1b2   :  { %v491_v1 = vpop.f32.mrf.mxu1 }
 0x1b3   :  { %v492_v28 = vadd.f32 %v491_v1, %v278_v10  ;;  %v520_v40 = vmax.f32 %v490_v34, 0.0 }
 0x1b4   :  { %v495_v2 = vpop.f32.mrf.mxu1 }
 0x1b5   :  { %v496_v48 = vadd.f32 %v495_v2, %v274_v9  ;;  %v521_v31 = vmax.f32 %v492_v28, 0.0  ;;  %v533_v45 = vpack.c.bf16 %v520_v40, %v518_v42 }
 0x1b6   :  { %v497_v3 = vpop.f32.mrf.mxu1 }
 0x1b7   :  { %v498_v17 = vadd.f32 %v497_v3, %v278_v10  ;;  %v522_v32 = vmax.f32 %v496_v48, 0.0  ;;  %v534_v37 = vpack.c.bf16 %v521_v31, %v519_v33 }
 0x1b8   :  { %v499_v4 = vpop.f32.mrf.mxu1 }
 0x1b9   :  { %v523_v24 = vmax.f32 %v498_v17, 0.0  ;;  %v500_v26 = vadd.f32 %v499_v4, %v274_v9 }
 0x1ba   :  { %v501_v5 = vpop.f32.mrf.mxu1 }
 0x1bb   :  { %v502_v12 = vadd.f32 %v501_v5, %v278_v10  ;;  %v524_v30 = vmax.f32 %v500_v26, 0.0 }
 0x1bc   :  { %v505_v7 = vpop.f32.mrf.mxu1 }
 0x1bd   :  { %v506_v15 = vadd.f32 %v505_v7, %v274_v9  ;;  %v525_v20 = vmax.f32 %v502_v12, 0.0  ;;  %v535_v35 = vpack.c.bf16 %v524_v30, %v522_v32 }
 0x1be   :  { %v507_v8 = vpop.f32.mrf.mxu1 }
 0x1bf   :  { %v508_v13 = vadd.f32 %v507_v8, %v278_v10  ;;  %v526_v23 = vmax.f32 %v506_v15, 0.0  ;;  %v536_v47 = vpack.c.bf16 %v525_v20, %v523_v24 }
 0x1c0   :  { %v509_v11 = vpop.f32.mrf.mxu1 }
 0x1c1   :  { %v510_v14 = vadd.f32 %v509_v11, %v274_v9  ;;  %v527_v21 = vmax.f32 %v508_v13, 0.0 }
 0x1c2   :  { %v511_v16 = vpop.f32.mrf.mxu1 }
 0x1c3   :  { %v512_v18 = vadd.f32 %v511_v16, %v278_v10  ;;  %v528_v19 = vmax.f32 %v510_v14, 0.0 }
 0x1c5   :  { %v529_v22 = vmax.f32 %v512_v18, 0.0  ;;  %v537_v27 = vpack.c.bf16 %v528_v19, %v526_v23 }
 0x1c7   :  { %v538_v25 = vpack.c.bf16 %v529_v22, %v527_v21 }
 0x1c9   :  { %582 = vmatprep.subr.bf16.mxu0 %v538_v25 }
 0x1ca   :  { %583 = vmatpush1.bf16.xpose.msra.mxu0 %v537_v27 }
 0x1cb   :  { %584 = vmatprep.subr.bf16.mxu0 %v536_v47 }
 0x1d2   :  { %585 = vmatpush1.bf16.xpose.msra.mxu0 %v535_v35 }
 0x1d3   :  { %586 = vmatprep.subr.bf16.mxu0 %v534_v37 }
 0x1da   :  { %587 = vmatpush1.bf16.xpose.msra.mxu0 %v533_v45 }
 0x1db   :  { %588 = vmatprep.subr.bf16.mxu0 %v532_v46 }
 0x1e2   :  { %589 = vmatpush1.bf16.xpose.msra.mxu0 %v531_v56 }
 0x1e9   :  { %607 = vmatmul.mubr.bf16.vlgmr.msra.gmra.mxu0 %v564_v54 }
 0x2a9   :  { %v608_v61 = vpop.f32.mrf.mxu0 }
 0x2aa   :  { %v609_v60 = vadd.f32 %v608_v61, %v548_v59 }
 0x2ab   :  { %v610_v58 = vpop.f32.mrf.mxu0 }
 0x2ac   :  { %615 = vst.msk [vmem:[#allocation6] sm:$0x1] %vm614_vm2, %v609_v60 }
 0x2ad   :  { %v611_v62 = vpop.f32.mrf.mxu0 }
 0x2ae   :  { %761 = shalt.err (!%p758_p9)
}
 0x2af   :  { %625 = dma.vmem_to_hbm [thread:$0]  %s623_s10, 16, %s916_s7, [#allocation5]   ;;  %v612_v49 = vpop.f32.mrf.mxu0 }
 0x2b0   :  { %772 = dma.done.wait [#allocation5], 16  }
 0x2b1   :  { %773 = vsyncadd [#allocation5], 4294967280 }
 0x2b2   :  { %629 = vsyncpa [#allocation4], 1 }
 0x2b3   :  { %630 = vsyncpa [#allocation5], 1 }

</bundles_post_ra>
